<compile_context>
chip_gen: v5e
topology: v5e:2x2
jax: 0.10.0
libtpu: 0.0.40
codegen_flags: <defaults>
</compile_context>

<pallas_src>
import math

import jax
import jax.numpy as jnp
from jax import lax
from jax.experimental import pallas as pl
from jax.experimental.pallas import tpu as pltpu


def _make_cross_attention_kernel(num_heads: int, compute_dtype):
    def kernel(q_ref, k_ref, v_ref,
               wq_ref, bq_ref, wk_ref, bk_ref, wv_ref, bv_ref,
               wo_ref, bo_ref,
               o_ref,
               kproj_ref, vproj_ref, acc_ref):
        qt = pl.program_id(1)

        # ---- K/V projections: computed once per batch element (qt == 0) and
        # kept resident in VMEM scratch across all q-tiles of this batch. ----
        @pl.when(qt == 0)
        def _():
            k = k_ref[0].astype(compute_dtype)   # (Lk, E)
            v = v_ref[0].astype(compute_dtype)   # (Lk, E)

            @pl.loop(0, num_heads)
            def _(h):
                kh = jnp.dot(k, wk_ref[h],
                             preferred_element_type=jnp.float32) + bk_ref[h]
                vh = jnp.dot(v, wv_ref[h],
                             preferred_element_type=jnp.float32) + bv_ref[h]
                kproj_ref[h] = kh.astype(compute_dtype)
                vproj_ref[h] = vh.astype(compute_dtype)

        q = q_ref[0].astype(compute_dtype)       # (tile_q, E)
        acc_ref[...] = jnp.zeros_like(acc_ref)   # (tile_q, E) f32

        # Rolled head loop: dynamic leading-axis indexing of head-major weight
        # refs; each head's context is folded straight into the Wo projection.
        @pl.loop(0, num_heads)
        def _(h):
            # Q projection for this head (softmax scale pre-folded into wq/bq).
            qh = jnp.dot(q, wq_ref[h],
                         preferred_element_type=jnp.float32) + bq_ref[h]
            qh = qh.astype(compute_dtype)        # (tile_q, Dh)

            kh = kproj_ref[h]                    # (Lk, Dh) bf16
            vh = vproj_ref[h]                    # (Lk, Dh) bf16

            # (tq, Dh) x (Lk, Dh) contracting the last axes -> (tq, Lk);
            # no explicit transpose / XLU work.
            scores = lax.dot_general(
                qh, kh,
                dimension_numbers=(((1,), (1,)), ((), ())),
                preferred_element_type=jnp.float32)

            m = jnp.max(scores, axis=-1, keepdims=True)
            p = jnp.exp(scores - m)
            denom = jnp.sum(p, axis=-1, keepdims=True)
            r = pl.reciprocal(denom, approx=True)     # EUP slot
            r = r * (2.0 - denom * r)                 # 1 NR step -> near-exact
            probs = (p * r).astype(compute_dtype)

            ctx = jnp.dot(probs, vh, preferred_element_type=jnp.float32)
            acc_ref[...] += jnp.dot(ctx.astype(compute_dtype), wo_ref[h],
                                    preferred_element_type=jnp.float32)

        o_ref[0] = (acc_ref[...] + bo_ref[...]).astype(o_ref.dtype)

    return kernel


def _choose_q_tile(lq: int):
    """Return (tile_q, padded_Lq): full extent when small, else 128/256 tiles."""
    if lq <= 256:
        return lq, lq
    for t in (256, 128):
        if lq % t == 0:
            return t, lq
    t = 128
    return t, ((lq + t - 1) // t) * t


def _vmem_limit_bytes():
    """Generation-aware VMEM limit (~80% of physical); None if unknown."""
    try:
        cap = pltpu.get_tpu_info().vmem_capacity_bytes
        return int(cap * 0.8)
    except Exception:
        return None


def cross_attention_pallas(query, key, value, params, *, num_heads,
                           compute_dtype=jnp.bfloat16):
    """Fused cross-attention forward.

    query: (B, Lq, E); key/value: (B, Lk, E).  Returns (B, Lq, E).
    params: dict with wq, bq, wk, bk, wv, bv, wo, bo (weights (E,E), biases
    (1,E)), stored so that x @ W + b matches PyTorch's Linear.
    """
    B, Lq, E = query.shape
    _, Lk, _ = key.shape
    assert E % num_heads == 0
    head_dim = E // num_heads
    out_dtype = query.dtype
    scale = 1.0 / math.sqrt(head_dim)

    # --- One-time XLA-side prep: head-major weight layout, softmax scale
    #     folded into the Q projection, MXU operands pre-cast to bf16. ---
    def split_w(w):   # (E, E) -> (H, E, Dh)
        return w.reshape(E, num_heads, head_dim).transpose(1, 0, 2)

    def split_b(b):   # (1, E) -> (H, 1, Dh)
        return b.reshape(1, num_heads, head_dim).transpose(1, 0, 2)

    wq = (split_w(params["wq"]) * scale).astype(compute_dtype)
    bq = (split_b(params["bq"]) * scale).astype(jnp.float32)
    wk = split_w(params["wk"]).astype(compute_dtype)
    bk = split_b(params["bk"]).astype(jnp.float32)
    wv = split_w(params["wv"]).astype(compute_dtype)
    bv = split_b(params["bv"]).astype(jnp.float32)
    wo = params["wo"].reshape(num_heads, head_dim, E).astype(compute_dtype)
    bo = params["bo"].astype(jnp.float32)

    q_in = query.astype(compute_dtype)
    k_in = key.astype(compute_dtype)
    v_in = value.astype(compute_dtype)

    tile_q, lq_pad = _choose_q_tile(Lq)
    if lq_pad != Lq:
        q_in = jnp.pad(q_in, ((0, 0), (0, lq_pad - Lq), (0, 0)))
    n_q_tiles = lq_pad // tile_q

    kernel = _make_cross_attention_kernel(num_heads, compute_dtype)

    cp_kwargs = dict(dimension_semantics=("parallel", "arbitrary"))
    limit = _vmem_limit_bytes()
    if limit is not None:
        cp_kwargs["vmem_limit_bytes"] = limit

    def build(single_buffer: bool):
        # Constant-index inputs: single-buffer to halve their resident VMEM.
        const_kw = {}
        if single_buffer and hasattr(pl, "Buffered"):
            const_kw = dict(pipeline_mode=pl.Buffered(1))

        q_spec = pl.BlockSpec((1, tile_q, E), lambda b, qt: (b, qt, 0))
        kv_spec = pl.BlockSpec((1, Lk, E), lambda b, qt: (b, 0, 0), **const_kw)
        w_spec = pl.BlockSpec((num_heads, E, head_dim),
                              lambda b, qt: (0, 0, 0), **const_kw)
        b_spec = pl.BlockSpec((num_heads, 1, head_dim),
                              lambda b, qt: (0, 0, 0), **const_kw)
        wo_spec = pl.BlockSpec((num_heads, head_dim, E),
                               lambda b, qt: (0, 0, 0), **const_kw)
        bo_spec = pl.BlockSpec((1, E), lambda b, qt: (0, 0), **const_kw)
        out_spec = pl.BlockSpec((1, tile_q, E), lambda b, qt: (b, qt, 0))

        return pl.pallas_call(
            kernel,
            out_shape=jax.ShapeDtypeStruct((B, lq_pad, E), out_dtype),
            grid_spec=pltpu.PrefetchScalarGridSpec(
                num_scalar_prefetch=0,
                grid=(B, n_q_tiles),
                in_specs=[q_spec, kv_spec, kv_spec,
                          w_spec, b_spec,      # q_linear
                          w_spec, b_spec,      # k_linear
                          w_spec, b_spec,      # v_linear
                          wo_spec, bo_spec],   # out_linear
                out_specs=out_spec,
                scratch_shapes=[
                    pltpu.VMEM((num_heads, Lk, head_dim), compute_dtype),  # K proj
                    pltpu.VMEM((num_heads, Lk, head_dim), compute_dtype),  # V proj
                    pltpu.VMEM((tile_q, E), jnp.float32),                  # acc
                ]),
            compiler_params=pltpu.CompilerParams(**cp_kwargs),
        )

    args = (q_in, k_in, v_in, wq, bq, wk, bk, wv, bv, wo, bo)
    try:
        out = build(single_buffer=True)(*args)
    except Exception:
        # Older JAX without BlockSpec pipeline_mode support: default buffering.
        out = build(single_buffer=False)(*args)

    if lq_pad != Lq:
        out = out[:, :Lq, :]
    return out


def cross_attention_ref(query, key, value, params, *, num_heads):
    """Pure-JAX f32 reference mirroring the PyTorch forward exactly."""
    B, Lq, E = query.shape
    head_dim = E // num_heads

    def linear(x, w, b):
        return jnp.einsum("ble,ef->blf", x, w) + b[0]

    Q = linear(query, params["wq"], params["bq"])
    K = linear(key, params["wk"], params["bk"])
    V = linear(value, params["wv"], params["bv"])

    def split_heads(x):
        B_, L_, _ = x.shape
        return x.reshape(B_, L_, num_heads, head_dim).transpose(0, 2, 1, 3)

    Qh, Kh, Vh = split_heads(Q), split_heads(K), split_heads(V)
    scores = jnp.einsum("bhqd,bhkd->bhqk", Qh, Kh) / math.sqrt(head_dim)
    weights = jax.nn.softmax(scores, axis=-1)
    attn = jnp.einsum("bhqk,bhkd->bhqd", weights, Vh)
    attn = attn.transpose(0, 2, 1, 3).reshape(B, Lq, E)
    return linear(attn, params["wo"], params["bo"])


def init_params(key, embed_dim):
    """Deterministic synthetic parameter init (uniform, Linear-like scale)."""
    ks = jax.random.split(key, 8)
    bound = 1.0 / math.sqrt(embed_dim)

    def w(k):
        return jax.random.uniform(k, (embed_dim, embed_dim), jnp.float32,
                                  minval=-bound, maxval=bound)

    def b(k):
        return jax.random.uniform(k, (1, embed_dim), jnp.float32,
                                  minval=-bound, maxval=bound)

    return {
        "wq": w(ks[0]), "bq": b(ks[1]),
        "wk": w(ks[2]), "bk": b(ks[3]),
        "wv": w(ks[4]), "bv": b(ks[5]),
        "wo": w(ks[6]), "bo": b(ks[7]),
    }


if __name__ == "__main__":
    B, Lq, Lk, E, H = 2, 8, 16, 32, 4

    root = jax.random.PRNGKey(0)
    k_q, k_k, k_v, k_p = jax.random.split(root, 4)

    query = jax.random.normal(k_q, (B, Lq, E), jnp.float32)
    key = jax.random.normal(k_k, (B, Lk, E), jnp.float32)
    value = jax.random.normal(k_v, (B, Lk, E), jnp.float32)
    params = init_params(k_p, E)

    out = cross_attention_pallas(query, key, value, params, num_heads=H)
    out = jax.block_until_ready(out)

    ref = cross_attention_ref(query, key, value, params, num_heads=H)
    assert out.shape == (B, Lq, E)
    err = float(jnp.max(jnp.abs(out - ref)))
    # Tolerance reflects bf16 MXU operands (all matmuls use bf16 inputs with
    # f32 accumulation); the softmax reciprocal itself is NR-refined.
    assert jnp.allclose(out, ref, atol=5e-2, rtol=5e-2), f"max abs err {err}"
    print("KERNEL_OK")
</pallas_src>

<mosaic_0001>
module attributes {stable_mosaic.version = 11 : i64} {
  func.func @kernel(%arg0: i32, %arg1: i32, %arg2: memref<1x8x32xbf16, #tpu.memory_space<vmem>>, %arg3: memref<1x16x32xbf16, #tpu.memory_space<vmem>>, %arg4: memref<1x16x32xbf16, #tpu.memory_space<vmem>>, %arg5: memref<4x32x8xbf16, #tpu.memory_space<vmem>>, %arg6: memref<4x1x8xf32, #tpu.memory_space<vmem>>, %arg7: memref<4x32x8xbf16, #tpu.memory_space<vmem>>, %arg8: memref<4x1x8xf32, #tpu.memory_space<vmem>>, %arg9: memref<4x32x8xbf16, #tpu.memory_space<vmem>>, %arg10: memref<4x1x8xf32, #tpu.memory_space<vmem>>, %arg11: memref<4x8x32xbf16, #tpu.memory_space<vmem>>, %arg12: memref<1x32xf32, #tpu.memory_space<vmem>>, %arg13: memref<1x8x32xf32, #tpu.memory_space<vmem>>, %arg14: memref<4x16x8xbf16, #tpu.memory_space<vmem>>, %arg15: memref<4x16x8xbf16, #tpu.memory_space<vmem>>, %arg16: memref<8x32xf32, #tpu.memory_space<vmem>>) attributes {dimension_semantics = [#tpu.dimension_semantics<parallel>, #tpu.dimension_semantics<arbitrary>], iteration_bounds = array<i64: 2, 1>, scalar_prefetch = 0 : i64, scratch_operands = 3 : i64, tpu.core_type = #tpu.core_type<tc>, window_params = [{transform_indices = @transform_0, window_bounds = array<i64: 1, 8, 32>}, {pipeline_mode = #tpu.pipeline_mode<synchronous>, transform_indices = @transform_1, window_bounds = array<i64: 1, 16, 32>}, {pipeline_mode = #tpu.pipeline_mode<synchronous>, transform_indices = @transform_2, window_bounds = array<i64: 1, 16, 32>}, {pipeline_mode = #tpu.pipeline_mode<synchronous>, transform_indices = @transform_3, window_bounds = array<i64: 4, 32, 8>}, {pipeline_mode = #tpu.pipeline_mode<synchronous>, transform_indices = @transform_4, window_bounds = array<i64: 4, 1, 8>}, {pipeline_mode = #tpu.pipeline_mode<synchronous>, transform_indices = @transform_5, window_bounds = array<i64: 4, 32, 8>}, {pipeline_mode = #tpu.pipeline_mode<synchronous>, transform_indices = @transform_6, window_bounds = array<i64: 4, 1, 8>}, {pipeline_mode = #tpu.pipeline_mode<synchronous>, transform_indices = @transform_7, window_bounds = array<i64: 4, 32, 8>}, {pipeline_mode = #tpu.pipeline_mode<synchronous>, transform_indices = @transform_8, window_bounds = array<i64: 4, 1, 8>}, {pipeline_mode = #tpu.pipeline_mode<synchronous>, transform_indices = @transform_9, window_bounds = array<i64: 4, 8, 32>}, {pipeline_mode = #tpu.pipeline_mode<synchronous>, transform_indices = @transform_10, window_bounds = array<i64: 1, 32>}, {transform_indices = @transform_11, window_bounds = array<i64: 1, 8, 32>}]} {
    %c0_i32 = arith.constant 0 : i32
    %0 = arith.cmpi eq, %arg1, %c0_i32 : i32
    %1 = arith.extui %0 : i1 to i32
    %c0_i32_0 = arith.constant 0 : i32
    %2 = arith.cmpi ne, %1, %c0_i32_0 : i32
    scf.if %2 {
      %c0_14 = arith.constant 0 : index
      %c0_15 = arith.constant 0 : index
      %c0_16 = arith.constant 0 : index
      %15 = vector.load %arg3[%c0_14, %c0_15, %c0_16] : memref<1x16x32xbf16, #tpu.memory_space<vmem>>, vector<1x16x32xbf16>
      %16 = vector.shape_cast %15 : vector<1x16x32xbf16> to vector<16x32xbf16>
      %c0_17 = arith.constant 0 : index
      %c0_18 = arith.constant 0 : index
      %c0_19 = arith.constant 0 : index
      %17 = vector.load %arg4[%c0_17, %c0_18, %c0_19] : memref<1x16x32xbf16, #tpu.memory_space<vmem>>, vector<1x16x32xbf16>
      %18 = vector.shape_cast %17 : vector<1x16x32xbf16> to vector<16x32xbf16>
      %c0_i32_20 = arith.constant 0 : i32
      %c4_i32_21 = arith.constant 4 : i32
      %19 = arith.addi %c0_i32_20, %c4_i32_21 : i32
      %c1_i32_22 = arith.constant 1 : i32
      scf.for %arg17 = %c0_i32_20 to %19 step %c1_i32_22  : i32 {
        %c1_i32_24 = arith.constant 1 : i32
        %20 = arith.muli %arg17, %c1_i32_24 : i32
        %c0_i32_25 = arith.constant 0 : i32
        %21 = arith.addi %c0_i32_25, %20 : i32
        %22 = arith.index_cast %21 : i32 to index
        %c0_26 = arith.constant 0 : index
        %c0_27 = arith.constant 0 : index
        %23 = vector.load %arg7[%22, %c0_26, %c0_27] : memref<4x32x8xbf16, #tpu.memory_space<vmem>>, vector<1x32x8xbf16>
        %24 = vector.shape_cast %23 : vector<1x32x8xbf16> to vector<32x8xbf16>
        %cst_28 = arith.constant dense<0.000000e+00> : vector<16x8xf32>
        %25 = tpu.matmul %16, %24, %cst_28 {dimension_numbers = #tpu.dot_dimension_numbers<[1], [0], [0], [1], [0, 0, 1, 1], [], []>} : vector<16x32xbf16>, vector<32x8xbf16>, vector<16x8xf32> -> vector<16x8xf32>
        %26 = arith.index_cast %21 : i32 to index
        %c0_29 = arith.constant 0 : index
        %c0_30 = arith.constant 0 : index
        %27 = vector.load %arg8[%26, %c0_29, %c0_30] : memref<4x1x8xf32, #tpu.memory_space<vmem>>, vector<1x1x8xf32>
        %28 = vector.shape_cast %27 : vector<1x1x8xf32> to vector<1x8xf32>
        %29 = vector.broadcast %28 : vector<1x8xf32> to vector<16x8xf32>
        %30 = arith.addf %25, %29 : vector<16x8xf32>
        %31 = arith.index_cast %21 : i32 to index
        %c0_31 = arith.constant 0 : index
        %c0_32 = arith.constant 0 : index
        %32 = vector.load %arg9[%31, %c0_31, %c0_32] : memref<4x32x8xbf16, #tpu.memory_space<vmem>>, vector<1x32x8xbf16>
        %33 = vector.shape_cast %32 : vector<1x32x8xbf16> to vector<32x8xbf16>
        %cst_33 = arith.constant dense<0.000000e+00> : vector<16x8xf32>
        %34 = tpu.matmul %18, %33, %cst_33 {dimension_numbers = #tpu.dot_dimension_numbers<[1], [0], [0], [1], [0, 0, 1, 1], [], []>} : vector<16x32xbf16>, vector<32x8xbf16>, vector<16x8xf32> -> vector<16x8xf32>
        %35 = arith.index_cast %21 : i32 to index
        %c0_34 = arith.constant 0 : index
        %c0_35 = arith.constant 0 : index
        %36 = vector.load %arg10[%35, %c0_34, %c0_35] : memref<4x1x8xf32, #tpu.memory_space<vmem>>, vector<1x1x8xf32>
        %37 = vector.shape_cast %36 : vector<1x1x8xf32> to vector<1x8xf32>
        %38 = vector.broadcast %37 : vector<1x8xf32> to vector<16x8xf32>
        %39 = arith.addf %34, %38 : vector<16x8xf32>
        %40 = arith.truncf %30 : vector<16x8xf32> to vector<16x8xbf16>
        %41 = arith.index_cast %21 : i32 to index
        %c0_36 = arith.constant 0 : index
        %c0_37 = arith.constant 0 : index
        %42 = vector.load %arg14[%41, %c0_36, %c0_37] : memref<4x16x8xbf16, #tpu.memory_space<vmem>>, vector<1x16x8xbf16>
        %43 = vector.shape_cast %42 : vector<1x16x8xbf16> to vector<16x8xbf16>
        %44 = vector.shape_cast %40 : vector<16x8xbf16> to vector<1x16x8xbf16>
        tpu.vector_store %arg14[%41, %c0_36, %c0_37], %44 {strides = array<i32>} : memref<4x16x8xbf16, #tpu.memory_space<vmem>>, vector<1x16x8xbf16>,
        %45 = arith.truncf %39 : vector<16x8xf32> to vector<16x8xbf16>
        %46 = arith.index_cast %21 : i32 to index
        %c0_38 = arith.constant 0 : index
        %c0_39 = arith.constant 0 : index
        %47 = vector.load %arg15[%46, %c0_38, %c0_39] : memref<4x16x8xbf16, #tpu.memory_space<vmem>>, vector<1x16x8xbf16>
        %48 = vector.shape_cast %47 : vector<1x16x8xbf16> to vector<16x8xbf16>
        %49 = vector.shape_cast %45 : vector<16x8xbf16> to vector<1x16x8xbf16>
        tpu.vector_store %arg15[%46, %c0_38, %c0_39], %49 {strides = array<i32>} : memref<4x16x8xbf16, #tpu.memory_space<vmem>>, vector<1x16x8xbf16>,
      }
      %c4_i32_23 = arith.constant 4 : i32
    } else {
    }
    %c0 = arith.constant 0 : index
    %c0_1 = arith.constant 0 : index
    %c0_2 = arith.constant 0 : index
    %3 = vector.load %arg2[%c0, %c0_1, %c0_2] : memref<1x8x32xbf16, #tpu.memory_space<vmem>>, vector<1x8x32xbf16>
    %4 = vector.shape_cast %3 : vector<1x8x32xbf16> to vector<8x32xbf16>
    %cst = arith.constant 0.000000e+00 : f32
    %5 = vector.broadcast %cst : f32 to vector<8x32xf32>
    %c0_3 = arith.constant 0 : index
    %c0_4 = arith.constant 0 : index
    %6 = vector.load %arg16[%c0_3, %c0_4] : memref<8x32xf32, #tpu.memory_space<vmem>>, vector<8x32xf32>
    tpu.vector_store %arg16[%c0_3, %c0_4], %5 {strides = array<i32>} : memref<8x32xf32, #tpu.memory_space<vmem>>, vector<8x32xf32>,
    %c0_i32_5 = arith.constant 0 : i32
    %c4_i32 = arith.constant 4 : i32
    %7 = arith.addi %c0_i32_5, %c4_i32 : i32
    %c1_i32 = arith.constant 1 : i32
    scf.for %arg17 = %c0_i32_5 to %7 step %c1_i32  : i32 {
      %c1_i32_14 = arith.constant 1 : i32
      %15 = arith.muli %arg17, %c1_i32_14 : i32
      %c0_i32_15 = arith.constant 0 : i32
      %16 = arith.addi %c0_i32_15, %15 : i32
      %17 = arith.index_cast %16 : i32 to index
      %c0_16 = arith.constant 0 : index
      %c0_17 = arith.constant 0 : index
      %18 = vector.load %arg5[%17, %c0_16, %c0_17] : memref<4x32x8xbf16, #tpu.memory_space<vmem>>, vector<1x32x8xbf16>
      %19 = vector.shape_cast %18 : vector<1x32x8xbf16> to vector<32x8xbf16>
      %cst_18 = arith.constant dense<0.000000e+00> : vector<8x8xf32>
      %20 = tpu.matmul %4, %19, %cst_18 {dimension_numbers = #tpu.dot_dimension_numbers<[1], [0], [0], [1], [0, 0, 1, 1], [], []>} : vector<8x32xbf16>, vector<32x8xbf16>, vector<8x8xf32> -> vector<8x8xf32>
      %21 = arith.index_cast %16 : i32 to index
      %c0_19 = arith.constant 0 : index
      %c0_20 = arith.constant 0 : index
      %22 = vector.load %arg6[%21, %c0_19, %c0_20] : memref<4x1x8xf32, #tpu.memory_space<vmem>>, vector<1x1x8xf32>
      %23 = vector.shape_cast %22 : vector<1x1x8xf32> to vector<1x8xf32>
      %24 = vector.broadcast %23 : vector<1x8xf32> to vector<8x8xf32>
      %25 = arith.addf %20, %24 : vector<8x8xf32>
      %26 = arith.truncf %25 : vector<8x8xf32> to vector<8x8xbf16>
      %27 = arith.index_cast %16 : i32 to index
      %c0_21 = arith.constant 0 : index
      %c0_22 = arith.constant 0 : index
      %28 = vector.load %arg14[%27, %c0_21, %c0_22] : memref<4x16x8xbf16, #tpu.memory_space<vmem>>, vector<1x16x8xbf16>
      %29 = vector.shape_cast %28 : vector<1x16x8xbf16> to vector<16x8xbf16>
      %30 = arith.index_cast %16 : i32 to index
      %c0_23 = arith.constant 0 : index
      %c0_24 = arith.constant 0 : index
      %31 = vector.load %arg15[%30, %c0_23, %c0_24] : memref<4x16x8xbf16, #tpu.memory_space<vmem>>, vector<1x16x8xbf16>
      %32 = vector.shape_cast %31 : vector<1x16x8xbf16> to vector<16x8xbf16>
      %cst_25 = arith.constant dense<0.000000e+00> : vector<8x16xf32>
      %33 = tpu.matmul %26, %29, %cst_25 {dimension_numbers = #tpu.dot_dimension_numbers<[1], [1], [0], [0], [0, 0, 1, 0], [], []>} : vector<8x8xbf16>, vector<16x8xbf16>, vector<8x16xf32> -> vector<8x16xf32>
      %cst_26 = arith.constant dense<0xFF800000> : vector<8xf32>
      %34 = vector.multi_reduction <maximumf>, %33, %cst_26 [1] : vector<8x16xf32> to vector<8xf32>
      %35 = vector.shape_cast %34 : vector<8xf32> to vector<8x1xf32>
      %36 = vector.broadcast %35 : vector<8x1xf32> to vector<8x16xf32>
      %37 = arith.subf %33, %36 : vector<8x16xf32>
      %38 = math.exp %37 : vector<8x16xf32>
      %cst_27 = arith.constant dense<0.000000e+00> : vector<8xf32>
      %39 = vector.multi_reduction <add>, %38, %cst_27 [1] : vector<8x16xf32> to vector<8xf32>
      %40 = vector.shape_cast %39 : vector<8xf32> to vector<8x1xf32>
      %41 = tpu.reciprocal %40 {approx = true} : vector<8x1xf32> -> vector<8x1xf32>
      %42 = arith.mulf %40, %41 : vector<8x1xf32>
      %cst_28 = arith.constant 2.000000e+00 : f32
      %43 = vector.broadcast %cst_28 : f32 to vector<8x1xf32>
      %44 = arith.subf %43, %42 : vector<8x1xf32>
      %45 = arith.mulf %41, %44 : vector<8x1xf32>
      %46 = vector.broadcast %45 : vector<8x1xf32> to vector<8x16xf32>
      %47 = arith.mulf %38, %46 : vector<8x16xf32>
      %48 = arith.truncf %47 : vector<8x16xf32> to vector<8x16xbf16>
      %cst_29 = arith.constant dense<0.000000e+00> : vector<8x8xf32>
      %49 = tpu.matmul %48, %32, %cst_29 {dimension_numbers = #tpu.dot_dimension_numbers<[1], [0], [0], [1], [0, 0, 1, 1], [], []>} : vector<8x16xbf16>, vector<16x8xbf16>, vector<8x8xf32> -> vector<8x8xf32>
      %c0_30 = arith.constant 0 : index
      %c0_31 = arith.constant 0 : index
      %50 = vector.load %arg16[%c0_30, %c0_31] : memref<8x32xf32, #tpu.memory_space<vmem>>, vector<8x32xf32>
      %51 = arith.truncf %49 : vector<8x8xf32> to vector<8x8xbf16>
      %52 = arith.index_cast %16 : i32 to index
      %c0_32 = arith.constant 0 : index
      %c0_33 = arith.constant 0 : index
      %53 = vector.load %arg11[%52, %c0_32, %c0_33] : memref<4x8x32xbf16, #tpu.memory_space<vmem>>, vector<1x8x32xbf16>
      %54 = vector.shape_cast %53 : vector<1x8x32xbf16> to vector<8x32xbf16>
      %cst_34 = arith.constant dense<0.000000e+00> : vector<8x32xf32>
      %55 = tpu.matmul %51, %54, %cst_34 {dimension_numbers = #tpu.dot_dimension_numbers<[1], [0], [0], [1], [0, 0, 1, 1], [], []>} : vector<8x8xbf16>, vector<8x32xbf16>, vector<8x32xf32> -> vector<8x32xf32>
      %56 = arith.addf %50, %55 : vector<8x32xf32>
      %c0_35 = arith.constant 0 : index
      %c0_36 = arith.constant 0 : index
      %57 = vector.load %arg16[%c0_35, %c0_36] : memref<8x32xf32, #tpu.memory_space<vmem>>, vector<8x32xf32>
      tpu.vector_store %arg16[%c0_35, %c0_36], %56 {strides = array<i32>} : memref<8x32xf32, #tpu.memory_space<vmem>>, vector<8x32xf32>,
    }
    %c4_i32_6 = arith.constant 4 : i32
    %c0_7 = arith.constant 0 : index
    %c0_8 = arith.constant 0 : index
    %8 = vector.load %arg16[%c0_7, %c0_8] : memref<8x32xf32, #tpu.memory_space<vmem>>, vector<8x32xf32>
    %c0_9 = arith.constant 0 : index
    %c0_10 = arith.constant 0 : index
    %9 = vector.load %arg12[%c0_9, %c0_10] : memref<1x32xf32, #tpu.memory_space<vmem>>, vector<1x32xf32>
    %10 = vector.broadcast %9 : vector<1x32xf32> to vector<8x32xf32>
    %11 = arith.addf %8, %10 : vector<8x32xf32>
    %c0_11 = arith.constant 0 : index
    %c0_12 = arith.constant 0 : index
    %c0_13 = arith.constant 0 : index
    %12 = vector.load %arg13[%c0_11, %c0_12, %c0_13] : memref<1x8x32xf32, #tpu.memory_space<vmem>>, vector<1x8x32xf32>
    %13 = vector.shape_cast %12 : vector<1x8x32xf32> to vector<8x32xf32>
    %14 = vector.shape_cast %11 : vector<8x32xf32> to vector<1x8x32xf32>
    tpu.vector_store %arg13[%c0_11, %c0_12, %c0_13], %14 {strides = array<i32>} : memref<1x8x32xf32, #tpu.memory_space<vmem>>, vector<1x8x32xf32>,
    return
  }
  func.func @transform_0(%arg0: i32, %arg1: i32) -> (i32, i32, i32) {
    %c0_i32 = arith.constant 0 : i32
    %c0_i32_0 = arith.constant 0 : i32
    return %arg0, %arg1, %c0_i32 : i32, i32, i32
  }
  func.func @transform_1(%arg0: i32, %arg1: i32) -> (i32, i32, i32) {
    %c0_i32 = arith.constant 0 : i32
    %c0_i32_0 = arith.constant 0 : i32
    %c0_i32_1 = arith.constant 0 : i32
    return %arg0, %c0_i32, %c0_i32_0 : i32, i32, i32
  }
  func.func @transform_2(%arg0: i32, %arg1: i32) -> (i32, i32, i32) {
    %c0_i32 = arith.constant 0 : i32
    %c0_i32_0 = arith.constant 0 : i32
    %c0_i32_1 = arith.constant 0 : i32
    return %arg0, %c0_i32, %c0_i32_0 : i32, i32, i32
  }
  func.func @transform_3(%arg0: i32, %arg1: i32) -> (i32, i32, i32) {
    %c0_i32 = arith.constant 0 : i32
    %c0_i32_0 = arith.constant 0 : i32
    %c0_i32_1 = arith.constant 0 : i32
    %c0_i32_2 = arith.constant 0 : i32
    return %c0_i32, %c0_i32_0, %c0_i32_1 : i32, i32, i32
  }
  func.func @transform_4(%arg0: i32, %arg1: i32) -> (i32, i32, i32) {
    %c0_i32 = arith.constant 0 : i32
    %c0_i32_0 = arith.constant 0 : i32
    %c0_i32_1 = arith.constant 0 : i32
    %c0_i32_2 = arith.constant 0 : i32
    return %c0_i32, %c0_i32_0, %c0_i32_1 : i32, i32, i32
  }
  func.func @transform_5(%arg0: i32, %arg1: i32) -> (i32, i32, i32) {
    %c0_i32 = arith.constant 0 : i32
    %c0_i32_0 = arith.constant 0 : i32
    %c0_i32_1 = arith.constant 0 : i32
    %c0_i32_2 = arith.constant 0 : i32
    return %c0_i32, %c0_i32_0, %c0_i32_1 : i32, i32, i32
  }
  func.func @transform_6(%arg0: i32, %arg1: i32) -> (i32, i32, i32) {
    %c0_i32 = arith.constant 0 : i32
    %c0_i32_0 = arith.constant 0 : i32
    %c0_i32_1 = arith.constant 0 : i32
    %c0_i32_2 = arith.constant 0 : i32
    return %c0_i32, %c0_i32_0, %c0_i32_1 : i32, i32, i32
  }
  func.func @transform_7(%arg0: i32, %arg1: i32) -> (i32, i32, i32) {
    %c0_i32 = arith.constant 0 : i32
    %c0_i32_0 = arith.constant 0 : i32
    %c0_i32_1 = arith.constant 0 : i32
    %c0_i32_2 = arith.constant 0 : i32
    return %c0_i32, %c0_i32_0, %c0_i32_1 : i32, i32, i32
  }
  func.func @transform_8(%arg0: i32, %arg1: i32) -> (i32, i32, i32) {
    %c0_i32 = arith.constant 0 : i32
    %c0_i32_0 = arith.constant 0 : i32
    %c0_i32_1 = arith.constant 0 : i32
    %c0_i32_2 = arith.constant 0 : i32
    return %c0_i32, %c0_i32_0, %c0_i32_1 : i32, i32, i32
  }
  func.func @transform_9(%arg0: i32, %arg1: i32) -> (i32, i32, i32) {
    %c0_i32 = arith.constant 0 : i32
    %c0_i32_0 = arith.constant 0 : i32
    %c0_i32_1 = arith.constant 0 : i32
    %c0_i32_2 = arith.constant 0 : i32
    return %c0_i32, %c0_i32_0, %c0_i32_1 : i32, i32, i32
  }
  func.func @transform_10(%arg0: i32, %arg1: i32) -> (i32, i32) {
    %c0_i32 = arith.constant 0 : i32
    %c0_i32_0 = arith.constant 0 : i32
    %c0_i32_1 = arith.constant 0 : i32
    return %c0_i32, %c0_i32_0 : i32, i32
  }
  func.func @transform_11(%arg0: i32, %arg1: i32) -> (i32, i32, i32) {
    %c0_i32 = arith.constant 0 : i32
    %c0_i32_0 = arith.constant 0 : i32
    return %arg0, %arg1, %c0_i32 : i32, i32, i32
  }
}

module attributes {stable_mosaic.version = 11 : i64} {
  func.func @kernel(%arg0: i32, %arg1: i32, %arg2: memref<1x8x32xbf16, #tpu.memory_space<vmem>>, %arg3: memref<1x16x32xbf16, #tpu.memory_space<vmem>>, %arg4: memref<1x16x32xbf16, #tpu.memory_space<vmem>>, %arg5: memref<4x32x8xbf16, #tpu.memory_space<vmem>>, %arg6: memref<4x1x8xf32, #tpu.memory_space<vmem>>, %arg7: memref<4x32x8xbf16, #tpu.memory_space<vmem>>, %arg8: memref<4x1x8xf32, #tpu.memory_space<vmem>>, %arg9: memref<4x32x8xbf16, #tpu.memory_space<vmem>>, %arg10: memref<4x1x8xf32, #tpu.memory_space<vmem>>, %arg11: memref<4x8x32xbf16, #tpu.memory_space<vmem>>, %arg12: memref<1x32xf32, #tpu.memory_space<vmem>>, %arg13: memref<1x8x32xf32, #tpu.memory_space<vmem>>, %arg14: memref<4x16x8xbf16, #tpu.memory_space<vmem>>, %arg15: memref<4x16x8xbf16, #tpu.memory_space<vmem>>, %arg16: memref<8x32xf32, #tpu.memory_space<vmem>>) attributes {dimension_semantics = [#tpu.dimension_semantics<parallel>, #tpu.dimension_semantics<arbitrary>], iteration_bounds = array<i64: 2, 1>, scalar_prefetch = 0 : i64, scratch_operands = 3 : i64, tpu.core_type = #tpu.core_type<tc>, window_params = [{transform_indices = @transform_0, window_bounds = array<i64: 1, 8, 32>}, {transform_indices = @transform_1, window_bounds = array<i64: 1, 16, 32>}, {transform_indices = @transform_2, window_bounds = array<i64: 1, 16, 32>}, {pipeline_mode = #tpu.pipeline_mode<synchronous>, transform_indices = @transform_3, window_bounds = array<i64: 4, 32, 8>}, {pipeline_mode = #tpu.pipeline_mode<synchronous>, transform_indices = @transform_4, window_bounds = array<i64: 4, 1, 8>}, {pipeline_mode = #tpu.pipeline_mode<synchronous>, transform_indices = @transform_5, window_bounds = array<i64: 4, 32, 8>}, {pipeline_mode = #tpu.pipeline_mode<synchronous>, transform_indices = @transform_6, window_bounds = array<i64: 4, 1, 8>}, {pipeline_mode = #tpu.pipeline_mode<synchronous>, transform_indices = @transform_7, window_bounds = array<i64: 4, 32, 8>}, {pipeline_mode = #tpu.pipeline_mode<synchronous>, transform_indices = @transform_8, window_bounds = array<i64: 4, 1, 8>}, {pipeline_mode = #tpu.pipeline_mode<synchronous>, transform_indices = @transform_9, window_bounds = array<i64: 4, 8, 32>}, {pipeline_mode = #tpu.pipeline_mode<synchronous>, transform_indices = @transform_10, window_bounds = array<i64: 1, 32>}, {transform_indices = @transform_11, window_bounds = array<i64: 1, 8, 32>}]} {
    %c0_i32 = arith.constant 0 : i32
    %0 = arith.cmpi eq, %arg1, %c0_i32 : i32
    %1 = arith.extui %0 : i1 to i32
    %c0_i32_0 = arith.constant 0 : i32
    %2 = arith.cmpi ne, %1, %c0_i32_0 : i32
    scf.if %2 {
      %c0_14 = arith.constant 0 : index
      %c0_15 = arith.constant 0 : index
      %c0_16 = arith.constant 0 : index
      %15 = vector.load %arg3[%c0_14, %c0_15, %c0_16] : memref<1x16x32xbf16, #tpu.memory_space<vmem>>, vector<1x16x32xbf16>
      %16 = vector.shape_cast %15 : vector<1x16x32xbf16> to vector<16x32xbf16>
      %c0_17 = arith.constant 0 : index
      %c0_18 = arith.constant 0 : index
      %c0_19 = arith.constant 0 : index
      %17 = vector.load %arg4[%c0_17, %c0_18, %c0_19] : memref<1x16x32xbf16, #tpu.memory_space<vmem>>, vector<1x16x32xbf16>
      %18 = vector.shape_cast %17 : vector<1x16x32xbf16> to vector<16x32xbf16>
      %c0_i32_20 = arith.constant 0 : i32
      %c4_i32_21 = arith.constant 4 : i32
      %19 = arith.addi %c0_i32_20, %c4_i32_21 : i32
      %c1_i32_22 = arith.constant 1 : i32
      scf.for %arg17 = %c0_i32_20 to %19 step %c1_i32_22  : i32 {
        %c1_i32_24 = arith.constant 1 : i32
        %20 = arith.muli %arg17, %c1_i32_24 : i32
        %c0_i32_25 = arith.constant 0 : i32
        %21 = arith.addi %c0_i32_25, %20 : i32
        %22 = arith.index_cast %21 : i32 to index
        %c0_26 = arith.constant 0 : index
        %c0_27 = arith.constant 0 : index
        %23 = vector.load %arg7[%22, %c0_26, %c0_27] : memref<4x32x8xbf16, #tpu.memory_space<vmem>>, vector<1x32x8xbf16>
        %24 = vector.shape_cast %23 : vector<1x32x8xbf16> to vector<32x8xbf16>
        %cst_28 = arith.constant dense<0.000000e+00> : vector<16x8xf32>
        %25 = tpu.matmul %16, %24, %cst_28 {dimension_numbers = #tpu.dot_dimension_numbers<[1], [0], [0], [1], [0, 0, 1, 1], [], []>} : vector<16x32xbf16>, vector<32x8xbf16>, vector<16x8xf32> -> vector<16x8xf32>
        %26 = arith.index_cast %21 : i32 to index
        %c0_29 = arith.constant 0 : index
        %c0_30 = arith.constant 0 : index
        %27 = vector.load %arg8[%26, %c0_29, %c0_30] : memref<4x1x8xf32, #tpu.memory_space<vmem>>, vector<1x1x8xf32>
        %28 = vector.shape_cast %27 : vector<1x1x8xf32> to vector<1x8xf32>
        %29 = vector.broadcast %28 : vector<1x8xf32> to vector<16x8xf32>
        %30 = arith.addf %25, %29 : vector<16x8xf32>
        %31 = arith.index_cast %21 : i32 to index
        %c0_31 = arith.constant 0 : index
        %c0_32 = arith.constant 0 : index
        %32 = vector.load %arg9[%31, %c0_31, %c0_32] : memref<4x32x8xbf16, #tpu.memory_space<vmem>>, vector<1x32x8xbf16>
        %33 = vector.shape_cast %32 : vector<1x32x8xbf16> to vector<32x8xbf16>
        %cst_33 = arith.constant dense<0.000000e+00> : vector<16x8xf32>
        %34 = tpu.matmul %18, %33, %cst_33 {dimension_numbers = #tpu.dot_dimension_numbers<[1], [0], [0], [1], [0, 0, 1, 1], [], []>} : vector<16x32xbf16>, vector<32x8xbf16>, vector<16x8xf32> -> vector<16x8xf32>
        %35 = arith.index_cast %21 : i32 to index
        %c0_34 = arith.constant 0 : index
        %c0_35 = arith.constant 0 : index
        %36 = vector.load %arg10[%35, %c0_34, %c0_35] : memref<4x1x8xf32, #tpu.memory_space<vmem>>, vector<1x1x8xf32>
        %37 = vector.shape_cast %36 : vector<1x1x8xf32> to vector<1x8xf32>
        %38 = vector.broadcast %37 : vector<1x8xf32> to vector<16x8xf32>
        %39 = arith.addf %34, %38 : vector<16x8xf32>
        %40 = arith.truncf %30 : vector<16x8xf32> to vector<16x8xbf16>
        %41 = arith.index_cast %21 : i32 to index
        %c0_36 = arith.constant 0 : index
        %c0_37 = arith.constant 0 : index
        %42 = vector.load %arg14[%41, %c0_36, %c0_37] : memref<4x16x8xbf16, #tpu.memory_space<vmem>>, vector<1x16x8xbf16>
        %43 = vector.shape_cast %42 : vector<1x16x8xbf16> to vector<16x8xbf16>
        %44 = vector.shape_cast %40 : vector<16x8xbf16> to vector<1x16x8xbf16>
        tpu.vector_store %arg14[%41, %c0_36, %c0_37], %44 {strides = array<i32>} : memref<4x16x8xbf16, #tpu.memory_space<vmem>>, vector<1x16x8xbf16>,
        %45 = arith.truncf %39 : vector<16x8xf32> to vector<16x8xbf16>
        %46 = arith.index_cast %21 : i32 to index
        %c0_38 = arith.constant 0 : index
        %c0_39 = arith.constant 0 : index
        %47 = vector.load %arg15[%46, %c0_38, %c0_39] : memref<4x16x8xbf16, #tpu.memory_space<vmem>>, vector<1x16x8xbf16>
        %48 = vector.shape_cast %47 : vector<1x16x8xbf16> to vector<16x8xbf16>
        %49 = vector.shape_cast %45 : vector<16x8xbf16> to vector<1x16x8xbf16>
        tpu.vector_store %arg15[%46, %c0_38, %c0_39], %49 {strides = array<i32>} : memref<4x16x8xbf16, #tpu.memory_space<vmem>>, vector<1x16x8xbf16>,
      }
      %c4_i32_23 = arith.constant 4 : i32
    } else {
    }
    %c0 = arith.constant 0 : index
    %c0_1 = arith.constant 0 : index
    %c0_2 = arith.constant 0 : index
    %3 = vector.load %arg2[%c0, %c0_1, %c0_2] : memref<1x8x32xbf16, #tpu.memory_space<vmem>>, vector<1x8x32xbf16>
    %4 = vector.shape_cast %3 : vector<1x8x32xbf16> to vector<8x32xbf16>
    %cst = arith.constant 0.000000e+00 : f32
    %5 = vector.broadcast %cst : f32 to vector<8x32xf32>
    %c0_3 = arith.constant 0 : index
    %c0_4 = arith.constant 0 : index
    %6 = vector.load %arg16[%c0_3, %c0_4] : memref<8x32xf32, #tpu.memory_space<vmem>>, vector<8x32xf32>
    tpu.vector_store %arg16[%c0_3, %c0_4], %5 {strides = array<i32>} : memref<8x32xf32, #tpu.memory_space<vmem>>, vector<8x32xf32>,
    %c0_i32_5 = arith.constant 0 : i32
    %c4_i32 = arith.constant 4 : i32
    %7 = arith.addi %c0_i32_5, %c4_i32 : i32
    %c1_i32 = arith.constant 1 : i32
    scf.for %arg17 = %c0_i32_5 to %7 step %c1_i32  : i32 {
      %c1_i32_14 = arith.constant 1 : i32
      %15 = arith.muli %arg17, %c1_i32_14 : i32
      %c0_i32_15 = arith.constant 0 : i32
      %16 = arith.addi %c0_i32_15, %15 : i32
      %17 = arith.index_cast %16 : i32 to index
      %c0_16 = arith.constant 0 : index
      %c0_17 = arith.constant 0 : index
      %18 = vector.load %arg5[%17, %c0_16, %c0_17] : memref<4x32x8xbf16, #tpu.memory_space<vmem>>, vector<1x32x8xbf16>
      %19 = vector.shape_cast %18 : vector<1x32x8xbf16> to vector<32x8xbf16>
      %cst_18 = arith.constant dense<0.000000e+00> : vector<8x8xf32>
      %20 = tpu.matmul %4, %19, %cst_18 {dimension_numbers = #tpu.dot_dimension_numbers<[1], [0], [0], [1], [0, 0, 1, 1], [], []>} : vector<8x32xbf16>, vector<32x8xbf16>, vector<8x8xf32> -> vector<8x8xf32>
      %21 = arith.index_cast %16 : i32 to index
      %c0_19 = arith.constant 0 : index
      %c0_20 = arith.constant 0 : index
      %22 = vector.load %arg6[%21, %c0_19, %c0_20] : memref<4x1x8xf32, #tpu.memory_space<vmem>>, vector<1x1x8xf32>
      %23 = vector.shape_cast %22 : vector<1x1x8xf32> to vector<1x8xf32>
      %24 = vector.broadcast %23 : vector<1x8xf32> to vector<8x8xf32>
      %25 = arith.addf %20, %24 : vector<8x8xf32>
      %26 = arith.truncf %25 : vector<8x8xf32> to vector<8x8xbf16>
      %27 = arith.index_cast %16 : i32 to index
      %c0_21 = arith.constant 0 : index
      %c0_22 = arith.constant 0 : index
      %28 = vector.load %arg14[%27, %c0_21, %c0_22] : memref<4x16x8xbf16, #tpu.memory_space<vmem>>, vector<1x16x8xbf16>
      %29 = vector.shape_cast %28 : vector<1x16x8xbf16> to vector<16x8xbf16>
      %30 = arith.index_cast %16 : i32 to index
      %c0_23 = arith.constant 0 : index
      %c0_24 = arith.constant 0 : index
      %31 = vector.load %arg15[%30, %c0_23, %c0_24] : memref<4x16x8xbf16, #tpu.memory_space<vmem>>, vector<1x16x8xbf16>
      %32 = vector.shape_cast %31 : vector<1x16x8xbf16> to vector<16x8xbf16>
      %cst_25 = arith.constant dense<0.000000e+00> : vector<8x16xf32>
      %33 = tpu.matmul %26, %29, %cst_25 {dimension_numbers = #tpu.dot_dimension_numbers<[1], [1], [0], [0], [0, 0, 1, 0], [], []>} : vector<8x8xbf16>, vector<16x8xbf16>, vector<8x16xf32> -> vector<8x16xf32>
      %cst_26 = arith.constant dense<0xFF800000> : vector<8xf32>
      %34 = vector.multi_reduction <maximumf>, %33, %cst_26 [1] : vector<8x16xf32> to vector<8xf32>
      %35 = vector.shape_cast %34 : vector<8xf32> to vector<8x1xf32>
      %36 = vector.broadcast %35 : vector<8x1xf32> to vector<8x16xf32>
      %37 = arith.subf %33, %36 : vector<8x16xf32>
      %38 = math.exp %37 : vector<8x16xf32>
      %cst_27 = arith.constant dense<0.000000e+00> : vector<8xf32>
      %39 = vector.multi_reduction <add>, %38, %cst_27 [1] : vector<8x16xf32> to vector<8xf32>
      %40 = vector.shape_cast %39 : vector<8xf32> to vector<8x1xf32>
      %41 = tpu.reciprocal %40 {approx = true} : vector<8x1xf32> -> vector<8x1xf32>
      %42 = arith.mulf %40, %41 : vector<8x1xf32>
      %cst_28 = arith.constant 2.000000e+00 : f32
      %43 = vector.broadcast %cst_28 : f32 to vector<8x1xf32>
      %44 = arith.subf %43, %42 : vector<8x1xf32>
      %45 = arith.mulf %41, %44 : vector<8x1xf32>
      %46 = vector.broadcast %45 : vector<8x1xf32> to vector<8x16xf32>
      %47 = arith.mulf %38, %46 : vector<8x16xf32>
      %48 = arith.truncf %47 : vector<8x16xf32> to vector<8x16xbf16>
      %cst_29 = arith.constant dense<0.000000e+00> : vector<8x8xf32>
      %49 = tpu.matmul %48, %32, %cst_29 {dimension_numbers = #tpu.dot_dimension_numbers<[1], [0], [0], [1], [0, 0, 1, 1], [], []>} : vector<8x16xbf16>, vector<16x8xbf16>, vector<8x8xf32> -> vector<8x8xf32>
      %c0_30 = arith.constant 0 : index
      %c0_31 = arith.constant 0 : index
      %50 = vector.load %arg16[%c0_30, %c0_31] : memref<8x32xf32, #tpu.memory_space<vmem>>, vector<8x32xf32>
      %51 = arith.truncf %49 : vector<8x8xf32> to vector<8x8xbf16>
      %52 = arith.index_cast %16 : i32 to index
      %c0_32 = arith.constant 0 : index
      %c0_33 = arith.constant 0 : index
      %53 = vector.load %arg11[%52, %c0_32, %c0_33] : memref<4x8x32xbf16, #tpu.memory_space<vmem>>, vector<1x8x32xbf16>
      %54 = vector.shape_cast %53 : vector<1x8x32xbf16> to vector<8x32xbf16>
      %cst_34 = arith.constant dense<0.000000e+00> : vector<8x32xf32>
      %55 = tpu.matmul %51, %54, %cst_34 {dimension_numbers = #tpu.dot_dimension_numbers<[1], [0], [0], [1], [0, 0, 1, 1], [], []>} : vector<8x8xbf16>, vector<8x32xbf16>, vector<8x32xf32> -> vector<8x32xf32>
      %56 = arith.addf %50, %55 : vector<8x32xf32>
      %c0_35 = arith.constant 0 : index
      %c0_36 = arith.constant 0 : index
      %57 = vector.load %arg16[%c0_35, %c0_36] : memref<8x32xf32, #tpu.memory_space<vmem>>, vector<8x32xf32>
      tpu.vector_store %arg16[%c0_35, %c0_36], %56 {strides = array<i32>} : memref<8x32xf32, #tpu.memory_space<vmem>>, vector<8x32xf32>,
    }
    %c4_i32_6 = arith.constant 4 : i32
    %c0_7 = arith.constant 0 : index
    %c0_8 = arith.constant 0 : index
    %8 = vector.load %arg16[%c0_7, %c0_8] : memref<8x32xf32, #tpu.memory_space<vmem>>, vector<8x32xf32>
    %c0_9 = arith.constant 0 : index
    %c0_10 = arith.constant 0 : index
    %9 = vector.load %arg12[%c0_9, %c0_10] : memref<1x32xf32, #tpu.memory_space<vmem>>, vector<1x32xf32>
    %10 = vector.broadcast %9 : vector<1x32xf32> to vector<8x32xf32>
    %11 = arith.addf %8, %10 : vector<8x32xf32>
    %c0_11 = arith.constant 0 : index
    %c0_12 = arith.constant 0 : index
    %c0_13 = arith.constant 0 : index
    %12 = vector.load %arg13[%c0_11, %c0_12, %c0_13] : memref<1x8x32xf32, #tpu.memory_space<vmem>>, vector<1x8x32xf32>
    %13 = vector.shape_cast %12 : vector<1x8x32xf32> to vector<8x32xf32>
    %14 = vector.shape_cast %11 : vector<8x32xf32> to vector<1x8x32xf32>
    tpu.vector_store %arg13[%c0_11, %c0_12, %c0_13], %14 {strides = array<i32>} : memref<1x8x32xf32, #tpu.memory_space<vmem>>, vector<1x8x32xf32>,
    return
  }
  func.func @transform_0(%arg0: i32, %arg1: i32) -> (i32, i32, i32) {
    %c0_i32 = arith.constant 0 : i32
    %c0_i32_0 = arith.constant 0 : i32
    return %arg0, %arg1, %c0_i32 : i32, i32, i32
  }
  func.func @transform_1(%arg0: i32, %arg1: i32) -> (i32, i32, i32) {
    %c0_i32 = arith.constant 0 : i32
    %c0_i32_0 = arith.constant 0 : i32
    %c0_i32_1 = arith.constant 0 : i32
    return %arg0, %c0_i32, %c0_i32_0 : i32, i32, i32
  }
  func.func @transform_2(%arg0: i32, %arg1: i32) -> (i32, i32, i32) {
    %c0_i32 = arith.constant 0 : i32
    %c0_i32_0 = arith.constant 0 : i32
    %c0_i32_1 = arith.constant 0 : i32
    return %arg0, %c0_i32, %c0_i32_0 : i32, i32, i32
  }
  func.func @transform_3(%arg0: i32, %arg1: i32) -> (i32, i32, i32) {
    %c0_i32 = arith.constant 0 : i32
    %c0_i32_0 = arith.constant 0 : i32
    %c0_i32_1 = arith.constant 0 : i32
    %c0_i32_2 = arith.constant 0 : i32
    return %c0_i32, %c0_i32_0, %c0_i32_1 : i32, i32, i32
  }
  func.func @transform_4(%arg0: i32, %arg1: i32) -> (i32, i32, i32) {
    %c0_i32 = arith.constant 0 : i32
    %c0_i32_0 = arith.constant 0 : i32
    %c0_i32_1 = arith.constant 0 : i32
    %c0_i32_2 = arith.constant 0 : i32
    return %c0_i32, %c0_i32_0, %c0_i32_1 : i32, i32, i32
  }
  func.func @transform_5(%arg0: i32, %arg1: i32) -> (i32, i32, i32) {
    %c0_i32 = arith.constant 0 : i32
    %c0_i32_0 = arith.constant 0 : i32
    %c0_i32_1 = arith.constant 0 : i32
    %c0_i32_2 = arith.constant 0 : i32
    return %c0_i32, %c0_i32_0, %c0_i32_1 : i32, i32, i32
  }
  func.func @transform_6(%arg0: i32, %arg1: i32) -> (i32, i32, i32) {
    %c0_i32 = arith.constant 0 : i32
    %c0_i32_0 = arith.constant 0 : i32
    %c0_i32_1 = arith.constant 0 : i32
    %c0_i32_2 = arith.constant 0 : i32
    return %c0_i32, %c0_i32_0, %c0_i32_1 : i32, i32, i32
  }
  func.func @transform_7(%arg0: i32, %arg1: i32) -> (i32, i32, i32) {
    %c0_i32 = arith.constant 0 : i32
    %c0_i32_0 = arith.constant 0 : i32
    %c0_i32_1 = arith.constant 0 : i32
    %c0_i32_2 = arith.constant 0 : i32
    return %c0_i32, %c0_i32_0, %c0_i32_1 : i32, i32, i32
  }
  func.func @transform_8(%arg0: i32, %arg1: i32) -> (i32, i32, i32) {
    %c0_i32 = arith.constant 0 : i32
    %c0_i32_0 = arith.constant 0 : i32
    %c0_i32_1 = arith.constant 0 : i32
    %c0_i32_2 = arith.constant 0 : i32
    return %c0_i32, %c0_i32_0, %c0_i32_1 : i32, i32, i32
  }
  func.func @transform_9(%arg0: i32, %arg1: i32) -> (i32, i32, i32) {
    %c0_i32 = arith.constant 0 : i32
    %c0_i32_0 = arith.constant 0 : i32
    %c0_i32_1 = arith.constant 0 : i32
    %c0_i32_2 = arith.constant 0 : i32
    return %c0_i32, %c0_i32_0, %c0_i32_1 : i32, i32, i32
  }
  func.func @transform_10(%arg0: i32, %arg1: i32) -> (i32, i32) {
    %c0_i32 = arith.constant 0 : i32
    %c0_i32_0 = arith.constant 0 : i32
    %c0_i32_1 = arith.constant 0 : i32
    return %c0_i32, %c0_i32_0 : i32, i32
  }
  func.func @transform_11(%arg0: i32, %arg1: i32) -> (i32, i32, i32) {
    %c0_i32 = arith.constant 0 : i32
    %c0_i32_0 = arith.constant 0 : i32
    return %arg0, %arg1, %c0_i32 : i32, i32, i32
  }
}

</mosaic_0001>

<bundles_post_ra>
// kernel: tpu_custom_call.1
= control target key start
LH: loop header
LB: loop body
LE: loop exit
PB: predicated region body
PF: predicated region fallthrough
CT: control target
= control target key end

     0   :  { %16 = vsyncpa [#allocation6], 0  ;;  %s1384_s0 = inlined_call_operand.vmem [shape: bf16[2,8,32], index: 0, kind: input, shape index: {}]   ;;  %s1385_s1 = inlined_call_operand.vmem [shape: bf16[2,16,32], index: 1, kind: input, shape index: {}]   ;;  %s1386_s2 = inlined_call_operand.vmem [shape: bf16[2,16,32], index: 2, kind: input, shape index: {}]   ;;  %s1387_s3 = inlined_call_operand.vmem [shape: bf16[4,32,8], index: 3, kind: input, shape index: {}]   ;;  %s1388_s4 = inlined_call_operand.vmem [shape: f32[4,1,8], index: 4, kind: input, shape index: {}]   ;;  %s1389_s5 = inlined_call_operand.vmem [shape: bf16[4,32,8], index: 5, kind: input, shape index: {}]   ;;  %s1390_s6 = inlined_call_operand.vmem [shape: f32[4,1,8], index: 6, kind: input, shape index: {}]   ;;  %s1391_s7 = inlined_call_operand.vmem [shape: bf16[4,32,8], index: 7, kind: input, shape index: {}]   ;;  %s1392_s8 = inlined_call_operand.vmem [shape: f32[4,1,8], index: 8, kind: input, shape index: {}]   ;;  %s1393_s9 = inlined_call_operand.vmem [shape: bf16[4,8,32], index: 9, kind: input, shape index: {}]   ;;  %s1394_s10 = inlined_call_operand.vmem [shape: f32[1,32], index: 10, kind: input, shape index: {}]   ;;  %s1395_s11 = inlined_call_operand.hbm [shape: f32[2,8,32], index: 11, kind: output, shape index: {}]  }
   0x1   :  { %18 = vsyncpa [#allocation6 + $0x1], 0  ;;  %s1200_s17 = smov 0   ;;  %s1202_s18 = smov 0  }
   0x2   :  { %s1204_s19 = smov 0   ;;  %s1206_s20 = smov 0  }
   0x3   :  { %s1208_s21 = smov 0   ;;  %s1210_s22 = smov 0  }
   0x4 LB: > { %1402 = sst [smem:[#allocation8_spill]] %s1109_s17  ;;  %s871_s23 = sadd.s32 4294967295, %s1129_s22   ;;  %s1129_s22 = sphi %s1210_s22, %s24_s22   ;;  %s1125_s21 = sphi %s1208_s21, %s1418_s21   ;;  %s1121_s20 = sphi %s1206_s20, %s1417_s20   ;;  %s1117_s19 = sphi %s1204_s19, %s1416_s19   ;;  %s1113_s18 = sphi %s1202_s18, %s1420_s18   ;;  %s1109_s17 = sphi %s1200_s17, %s1419_s17  }
   0x5   : > { %1403 = sst [smem:[#allocation9_spill]] %s1117_s19  ;;  %s872_s24 = sadd.s32 4294967294, %s1129_s22  }
   0x6   : > { %1404 = sst [smem:[#allocation10_spill]] %s1125_s21  ;;  %s36_s25 = sadd.s32 1, %s1125_s21 }
   0x7   : > { %s293_s26 = sadd.s32 1, %s1117_s19  ;;  %p38_p0 = scmp.ge.s32.totalorder %s36_s25, 2 }
   0x8   : > { %p303_p1 = scmp.ne.s32.totalorder %s1117_s19, %s1113_s18  ;;  %p304_p2 = scmp.eq.s32.totalorder %s871_s23, 1 }
   0x9   : > { %p309_p3 = scmp.ne.s32.totalorder %s1113_s18, %s1109_s17  ;;  %s1422_s25 = smov (%p38_p0, %s36_s25), 0 }
   0xa   : > { %1405 = sst [smem:[#allocation11_spill]] %s1422_s25  ;;  %p1240_p4 = por %p304_p2, %p303_p1 }
   0xb   : > { %p310_p5 = scmp.eq.s32.totalorder %s872_s24, 1  ;;  %s288_s28 = ssub.s32 %s1125_s21, %s1422_s25 }
   0xc   : > { %p875_p6 = scmp.ge.s32.totalorder %s1129_s22, 1  ;;  %p291_p7 = scmp.eq.s32.totalorder %s288_s28, 0 }
   0xd   : > { %p1247_p8 = por %p310_p5, %p309_p3  ;;  %p378_p9 = scmp.lt.s32.totalorder %s1129_s22, 3 }
   0xe   : > { %s1253_s30 = scalar_select %p291_p7, %s1117_s19, %s293_s26  }
   0xf   : > { %s1407_s29 = scalar_select %p1247_p8, 1, 0 }
  0x10   : > { %1409 = sst [smem:[#allocation13_spill]] %s1253_s30  ;;  %p379_p10 = pnand %p875_p6, %p378_p9 }
  0x11   : > { %1408 = sst [smem:[#allocation12_spill]] %s1407_s29  ;;  %s1400_s12 = sand.u32 (!%p379_p10), 1, %s1113_s18  }
  0x12   : > { %382 = sbr.rel (%p379_p10) target bundleno = 988 (0x3dc), region = 64  ;;  %p430_p11 = scmp.lt.s32.totalorder (!%p379_p10), %s1121_s20, 1 }
  0x13   : > { %s1259_s13 = sshll.u32 (!%p379_p10), %s1400_s12, 3  ;;  %s1274_s17 = smov (!%p379_p10), 0  }
  0x17   : > { %s431_s14 = scalar_select %p430_p11, %s1121_s20, 1 }
  0x19   : > { %s877_s15 = sshll.u32 %s431_s14, 2  ;;  %s944_s16 = sshll.u32 %s431_s14, 3 }
  0x1a   : > { %s1265_s26 = scalar_lea.vmem %s1384_s0, %s877_s15  ;;  %s441_s21 = scalar_lea.vmem %s1385_s1, %s944_s16 }
  0x1b   : > { %s446_s29 = scalar_lea.vmem %s1386_s2, %s944_s16  ;;  %v886_v0 = vld [vmem:[%s441_s21] sm:$0xf]  ;;  %v946_v1 = vld [vmem:[%s441_s21] sm:$0xf0] }
  0x1c   : > { %v900_v2 = vld [vmem:[%s446_s29] sm:$0xf]  ;;  %v947_v3 = vld [vmem:[%s446_s29] sm:$0xf0] }
  0x1d LB: >> { %s948_s25 = sshll.u32 %s1133_s17, 4  ;;  %s469_s19 = scalar_lea.vmem %s1390_s6, %s1133_s17  ;;  %v887_v8 = vor.u32 %v946_v1, %v886_v0  ;;  %v901_v9 = vor.u32 %v947_v3, %v900_v2  ;;  %vm491_vm0 = vcmask 261120   ;;  %vm559_vm1 = vcmask 60416   ;;  %s1133_s17 = sphi %s1274_s17, %s461_s17  }
  0x1e   : >> { %s464_s29 = scalar_lea.vmem %s1389_s5, %s948_s25  ;;  %s510_s24 = scalar_lea.vmem %s1391_s7, %s948_s25  ;;  %v1035_v10 = vld [vmem:[%s469_s19] ss:$0 sm:$0xff] }
  0x1f   : >> { %v950_v4 = vld [vmem:[%s464_s29 + $0x8] sm:$0xff]  ;;  %v949_v6 = vld [vmem:[%s464_s29] sm:$0xff]  ;;  %s515_s14 = scalar_lea.vmem %s1392_s8, %s1133_s17  ;;  %s954_s25 = sshll.u32 %s1133_s17, 3 }
  0x20   : >> { %v953_v5 = vld [vmem:[%s510_s24 + $0x8] sm:$0xff]  ;;  %501 = vmatpush.bf16.msra.mxu0 %v950_v4  ;;  %v952_v7 = vld [vmem:[%s510_s24] sm:$0xff]  ;;  %s558_s12 = scalar_lea.vmem [#allocation2], %s954_s25  ;;  %s565_s15 = scalar_lea.vmem [#allocation3], %s954_s25 }
  0x21   : >> { %546 = vmatpush.bf16.msra.mxu1 %v953_v5  ;;  %v1036_v11 = vld [vmem:[%s515_s14] ss:$0 sm:$0xff]  ;;  %s461_s17 = sadd.s32 1, %s1133_s17  }
  0x22   : >> { %p458_p12 = scmp.ge.s32.totalorder %s461_s17, 4  }
  0x23   : > { %v1301_v24 = vld [vmem:[%s1265_s26] sm:$0xf] (%p458_p12)  ;;  %v1139_v25 = vmov (%p458_p12), 0.0   ;;  %s1304_s19 = smov (%p458_p12), 0  }
  0x24   : >> { %502 = vmatpush.bf16.msra.mxu0 %v949_v6  ;;  %570 = vst.msk [vmem:[#allocation4] sm:$0xff] (%p458_p12), %vm491_vm0, %v1139_v25 }
  0x25   : >> { %547 = vmatpush.bf16.msra.mxu1 %v952_v7 }
  0x27   : >> { %896 = vmatmul.msk.bf16.vlgmr.msra.gmra.mxu0 %vm491_vm0, %v887_v8 }
  0x28   : >> { %910 = vmatmul.msk.bf16.vlgmr.msra.gmra.mxu1 %vm491_vm0, %v901_v9 }
  0xa4   : >> { %v504_v12 = vpop.f32.mrf.mxu0 }
  0xa5   : >> { %v549_v13 = vpop.f32.mrf.mxu1  ;;  %v505_v14 = vadd.f32 %v1035_v10, %v504_v12 }
  0xa6   : >> { %v550_v15 = vadd.f32 %v1036_v11, %v549_v13 }
  0xa7   : >> { %v554_v16 = vpack.c.bf16 %v505_v14, %v505_v14 }
  0xa8   : >> { %v562_v17 = vpack.c.bf16 %v550_v15, %v550_v15 }
  0xa9   : >> { %560 = vst.msk [vmem:[%s558_s12] sm:$0xf] %vm559_vm1, %v554_v16 }
  0xaa   : >> { %566 = vst.msk [vmem:[%s565_s15] sm:$0xf] %vm559_vm1, %v562_v17 }
  0xac   : >> { %v506_v18 = vpop.f32.mrf.mxu0 }
  0xad   : >> { %v551_v19 = vpop.f32.mrf.mxu1  ;;  %v507_v20 = vadd.f32 %v1035_v10, %v506_v18 }
  0xae   : >> { %v552_v21 = vadd.f32 %v1036_v11, %v551_v19  ;;  %460 = sbr.rel (!%p458_p12) target bundleno = 29 (0x1d), region = 134 }
  0xaf   : >> { %v555_v22 = vpack.c.bf16 %v507_v20, %v507_v20 }
  0xb0   : >> { %v563_v23 = vpack.c.bf16 %v552_v21, %v552_v21 }
  0xb1   : >> { %561 = vst.msk [vmem:[%s558_s12 + $0x4] sm:$0xf] %vm559_vm1, %v555_v22 }
  0xb2   : >> { %567 = vst.msk [vmem:[%s565_s15 + $0x4] sm:$0xf] %vm559_vm1, %v563_v23 }
  0xb3 LB: >> { %s956_s30 = sshll.u32 %s1137_s19, 4  ;;  %s959_s17 = sshll.u32 %s1137_s19, 3  ;;  %vm632_vm2 = vcmask 64512   ;;  %vm652_vm3 = vcmask 130048   ;;  %vm698_vm4 = vcmask 1043456   ;;  %v690_v56 = vld [vmem:[#allocation4] sm:$0xff]  ;;  %s1137_s19 = sphi %s1304_s19, %s576_s19  }
  0xb4   : >> { %s579_s26 = scalar_lea.vmem %s1387_s3, %s956_s30  ;;  %s620_s16 = scalar_lea.vmem [#allocation2], %s959_s17 }
  0xb5   : >> { %v958_v26 = vld [vmem:[%s579_s26 + $0x8] sm:$0xff]  ;;  %s584_s28 = scalar_lea.vmem %s1388_s4, %s1137_s19  ;;  %v957_v28 = vld [vmem:[%s579_s26] sm:$0xff]  ;;  %s624_s14 = scalar_lea.vmem [#allocation3], %s959_s17 }
  0xb6   : >> { %610 = vmatpush.bf16.msra.mxu0 %v958_v26  ;;  %v1037_v30 = vld [vmem:[%s584_s28] ss:$0 sm:$0xff]  ;;  %s938_s25 = sshll.u32 %s1137_s19, 2  ;;  %s576_s19 = sadd.s32 1, %s1137_s19  }
  0xb7   : >> { %s693_s30 = scalar_lea.vmem %s1393_s9, %s938_s25  ;;  %p573_p13 = scmp.ge.s32.totalorder %s576_s19, 4  }
  0xb8   : >> { %v960_v27 = vld [vmem:[%s620_s16] sm:$0xff]  ;;  %s941_s29 = sshll.u32 (%p573_p13), %s1121_s20, 3  ;;  %s1410_s26 = scalar_lea.vmem (%p573_p13), [#allocation5], %s1259_s13 }
  0xb9   : >> { %v637_v29 = vsel %vm632_vm2, %v960_v27, 0  ;;  %v962_v43 = vld [vmem:[%s624_s14] sm:$0xff]  ;;  %s738_s16 = sshll.u32 (%p573_p13), %s1410_s26, 4  ;;  %s736_s28 = scalar_lea.hbm (%p573_p13), %s1395_s11, %s941_s29  ;;  %s739_s16 = int_to_ptr.vmem [resolvable:$true] %s738_s16 }
  0xba   : >> { %646 = vmatpush.bf16.xpose.msra.mxu1 %v637_v29  ;;  %611 = vmatpush.bf16.msra.mxu0 %v957_v28  ;;  %v694_v51 = vld [vmem:[%s693_s30] sm:$0xf]  ;;  %s740_s19 = sshll.u32 (%p573_p13), %s736_s28, 4  ;;  %s1411_s14 = smov (%p573_p13), %s1410_s26  ;;  %s741_s19 = int_to_ptr.hbm [resolvable:$true] %s740_s19 }
  0xbb   : >> { %684 = vmatpush.bf16.msra.mxu2 %v962_v43  ;;  %v700_v52 = vsel %vm698_vm4, %v694_v51, 0  ;;  %v1042_v61 = vld [vmem:[%s1394_s10] ss:$0 sm:$0xff] (%p573_p13)  ;;  %s1412_s25 = sand.u32 (%p573_p13), 1, %s1113_s18   ;;  %s1057_s15 = sshra.s32 (%p573_p13), %s741_s19, 4  ;;  %s1058_s15 = int_to_ptr.hbm [resolvable:$true] %s1057_s15 }
  0xbc   : >> { %709 = vmatpush.bf16.msra.mxu3 %v700_v52  ;;  %s725_s12 = scalar_lea.sflag (%p573_p13), [#allocation6], %s1412_s25  ;;  %s1059_s30 = scalar_lea.hbm (%p573_p13), %s1058_s15, 8 }
  0xbd   : >> { %924 = vmatmul.msk.bf16.vlgmr.msra.gmra.mxu0 %vm491_vm0, %v1301_v24  ;;  %p1060_p0 = scmp.ne.s32.totalorder (%p573_p13), %s1058_s15, %s1059_s30  ;;  %s1063_s21 = scalar_lea.hbm (%p573_p13), %s1395_s11, 16 }
  0xbe   : > { %p1064_p3 = scmp.lt.s32.totalorder (%p573_p13), %s1058_s15, %s1395_s11  ;;  %p1065_p5 = scmp.lt.s32.totalorder (%p573_p13), %s1063_s21, %s1059_s30 }
  0xbf   : > { %p1061_p1 = pnand (%p573_p13), %p1060_p0, %p1240_p4 }
  0xc0   : > { %p1066_p6 = por (%p573_p13), %p1065_p5, %p1064_p3 }
  0xc1   : > { %p1062_p2 = pneg (%p573_p13), %p1061_p1 }
  0xc3   : > { %p1067_p7 = pnand (%p573_p13), %p1066_p6, %p1062_p2 }
 0x13a   : >> { %v613_v31 = vpop.f32.mrf.mxu0 }
 0x13b   : >> { %v614_v32 = vadd.f32 %v1037_v30, %v613_v31 }
 0x13d   : >> { %v617_v33 = vpack.c.bf16 %v614_v32, %v614_v32 }
 0x13f   : >> { %932 = vmatmul.msk.bf16.vlgmr.msra.gmra.mxu1 %vm632_vm2, %v617_v33 }
 0x142   : >> { %v615_v34 = vpop.f32.mrf.mxu0 }
 0x1bc   : >> { %v648_v35 = vpop.f32.mrf.mxu1 }
 0x1bd   : >> { %v653_v36 = vsel %vm652_vm3, %v648_v35, -inf }
 0x1be   : >> { %654 = vmax.xlane.f32.xlu0 %v653_v36 }
 0x1c4   : >> { %v650_v37 = vpop.f32.mrf.mxu1 }
 0x231   : >> { %v655_v38 = vpop.xlane.xlu0 %654 }
 0x232   : >> { %v656_v39 = vsub.f32 %v648_v35, %v655_v38 }
 0x234   : >> { %v657_v40 = vmul.f32 1.442695, %v656_v39 }
 0x236   : >> { %1038 = vpow2.f32 %v657_v40 }
 0x23c   : >> { %v1039_v41 = vpop.eup %1038 }
 0x23d   : >> { %v659_v42 = vsel %vm652_vm3, %v1039_v41, 0.0 }
 0x23e   : >> { %660 = vadd.xlane.f32.xlu0 %v659_v42 }
 0x2b1   : >> { %v661_v44 = vpop.xlane.xlu0 %660 }
 0x2b2   : >> { %1040 = vrcp.f32 %v661_v44 }
 0x2b8   : >> { %v1041_v45 = vpop.eup %1040 }
 0x2b9   : >> { %v663_v46 = vmul.f32 %v1041_v45, %v661_v44 }
 0x2bb   : >> { %v664_v47 = vsub.f32 2.0, %v663_v46 }
 0x2bd   : >> { %v665_v48 = vmul.f32 %v1041_v45, %v664_v47 }
 0x2bf   : >> { %v666_v49 = vmul.f32 %v1039_v41, %v665_v48 }
 0x2c1   : >> { %v667_v50 = vpack.c.bf16 %v666_v49, %v666_v49 }
 0x2c3   : >> { %937 = vmatmul.msk.bf16.vlgmr.msra.gmra.mxu2 %vm652_vm3, %v667_v50 }
 0x346   : >> { %v686_v53 = vpop.f32.mrf.mxu2 }
 0x347   : >> { %v691_v54 = vpack.c.bf16 %v686_v53, %v686_v53 }
 0x349   : >> { %939 = vmatmul.msk.bf16.vlgmr.msra.gmra.mxu3 %vm632_vm2, %v691_v54 }
 0x34e   : >> { %v688_v55 = vpop.f32.mrf.mxu2 }
 0x3cc   : >> { %v711_v57 = vpop.f32.mrf.mxu3 }
 0x3cd   : >> { %v715_v58 = vadd.f32 %v711_v57, %v690_v56 }
 0x3cf   : >> { %716 = vst.msk [vmem:[#allocation4] sm:$0xff] %vm491_vm0, %v715_v58 }
 0x3d4   : >> { %v713_v59 = vpop.f32.mrf.mxu3  ;;  %575 = sbr.rel (!%p573_p13) target bundleno = 179 (0xb3), region = 145 }
 0x3d6   : > { %v717_v60 = vld [vmem:[#allocation4] sm:$0xff] (%p573_p13) }
 0x3d7   : > { %v722_v62 = vadd.f32 (%p573_p13), %v1042_v61, %v717_v60 }
 0x3d9   : > { %723 = vst.msk [vmem:[%s1411_s14] sm:$0xff] %vm491_vm0, %v722_v62 }
 0x3da   : > { %1070 = shalt.err (!%p1067_p7)
}
 0x3db   : > { %963 = dma.vmem_to_hbm [thread:$0]  (%p1240_p4), %s739_s16, 128, %s741_s19, %s725_s12  }
 0x3dc PF: > { %s1413_s13 = sld [smem:[#allocation8_spill]]  ;;  %p969_p9 = scmp.ge.s32.totalorder %s1129_s22, 2 }
 0x3de   : > { %p966_p10 = pnand %p969_p9, %p1247_p8 }
 0x3e0   : > { %p967_p11 = pneg %p966_p10 }
 0x3e2   : > { %s752_s24 = sand.u32 1, %s1413_s13  }
 0x3e3   : > { %s753_s28 = scalar_lea.sflag [#allocation6], %s752_s24 }
 0x3e4   : > { %1104 = dma.done.wait (%p967_p11), %s753_s28, 128  }
 0x3e5   : > { %1106 = vsyncadd (%p967_p11), %s753_s28, 4294967168  ;;  %s24_s22 = sadd.s32 1, %s1129_s22   ;;  %s1415_s14 = sld [smem:[#allocation9_spill]] }
 0x3e6   : > { %p21_p12 = scmp.ge.s32.totalorder %s24_s22, 4   ;;  %s1416_s19 = sld [smem:[#allocation13_spill]] }
 0x3e7   : > { %s1417_s20 = sld [smem:[#allocation10_spill]]  ;;  %s1419_s17 = smov %s1113_s18 }
 0x3e8   : > { %s1418_s21 = sld [smem:[#allocation11_spill]]  ;;  %23 = sbr.rel (!%p21_p12) target bundleno = 4 (0x4), region = 156 }
 0x3eb   : > { %s1420_s18 = smov %s1415_s14 }
 0x3ed   :  { %759 = vsyncpa [#allocation6], 1 }
 0x3ee   :  { %761 = vsyncpa [#allocation6 + $0x1], 1 }

// kernel: tpu_custom_call.1
= control target key start
LH: loop header
LB: loop body
LE: loop exit
PB: predicated region body
PF: predicated region fallthrough
CT: control target
= control target key end

     0   :  { %16 = vsyncpa [#allocation6], 0  ;;  %s1378_s0 = inlined_call_operand.vmem [shape: bf16[2,8,32], index: 0, kind: input, shape index: {}]   ;;  %s1379_s1 = inlined_call_operand.vmem [shape: bf16[2,16,32], index: 1, kind: input, shape index: {}]   ;;  %s1380_s2 = inlined_call_operand.vmem [shape: bf16[2,16,32], index: 2, kind: input, shape index: {}]   ;;  %s1381_s3 = inlined_call_operand.vmem [shape: bf16[4,32,8], index: 3, kind: input, shape index: {}]   ;;  %s1382_s4 = inlined_call_operand.vmem [shape: f32[4,1,8], index: 4, kind: input, shape index: {}]   ;;  %s1383_s5 = inlined_call_operand.vmem [shape: bf16[4,32,8], index: 5, kind: input, shape index: {}]   ;;  %s1384_s6 = inlined_call_operand.vmem [shape: f32[4,1,8], index: 6, kind: input, shape index: {}]   ;;  %s1385_s7 = inlined_call_operand.vmem [shape: bf16[4,32,8], index: 7, kind: input, shape index: {}]   ;;  %s1386_s8 = inlined_call_operand.vmem [shape: f32[4,1,8], index: 8, kind: input, shape index: {}]   ;;  %s1387_s9 = inlined_call_operand.vmem [shape: bf16[4,8,32], index: 9, kind: input, shape index: {}]   ;;  %s1388_s10 = inlined_call_operand.vmem [shape: f32[1,32], index: 10, kind: input, shape index: {}]   ;;  %s1389_s11 = inlined_call_operand.hbm [shape: f32[2,8,32], index: 11, kind: output, shape index: {}]  }
   0x1   :  { %18 = vsyncpa [#allocation6 + $0x1], 0  ;;  %s1194_s17 = smov 0   ;;  %s1196_s18 = smov 0  }
   0x2   :  { %s1198_s19 = smov 0   ;;  %s1200_s20 = smov 0  }
   0x3   :  { %s1202_s21 = smov 0   ;;  %s1204_s22 = smov 0  }
   0x4 LB: > { %1396 = sst [smem:[#allocation8_spill]] %s1103_s17  ;;  %s865_s23 = sadd.s32 4294967295, %s1123_s22   ;;  %s1123_s22 = sphi %s1204_s22, %s24_s22   ;;  %s1119_s21 = sphi %s1202_s21, %s1412_s21   ;;  %s1115_s20 = sphi %s1200_s20, %s1411_s20   ;;  %s1111_s19 = sphi %s1198_s19, %s1410_s19   ;;  %s1107_s18 = sphi %s1196_s18, %s1414_s18   ;;  %s1103_s17 = sphi %s1194_s17, %s1413_s17  }
   0x5   : > { %1397 = sst [smem:[#allocation9_spill]] %s1111_s19  ;;  %s866_s24 = sadd.s32 4294967294, %s1123_s22  }
   0x6   : > { %1398 = sst [smem:[#allocation10_spill]] %s1119_s21  ;;  %s36_s25 = sadd.s32 1, %s1119_s21 }
   0x7   : > { %s293_s26 = sadd.s32 1, %s1111_s19  ;;  %p38_p0 = scmp.ge.s32.totalorder %s36_s25, 2 }
   0x8   : > { %p303_p1 = scmp.ne.s32.totalorder %s1111_s19, %s1107_s18  ;;  %p304_p2 = scmp.eq.s32.totalorder %s865_s23, 1 }
   0x9   : > { %p309_p3 = scmp.ne.s32.totalorder %s1107_s18, %s1103_s17  ;;  %s1416_s25 = smov (%p38_p0, %s36_s25), 0 }
   0xa   : > { %1399 = sst [smem:[#allocation11_spill]] %s1416_s25  ;;  %p1234_p4 = por %p304_p2, %p303_p1 }
   0xb   : > { %p310_p5 = scmp.eq.s32.totalorder %s866_s24, 1  ;;  %s288_s28 = ssub.s32 %s1119_s21, %s1416_s25 }
   0xc   : > { %p869_p6 = scmp.ge.s32.totalorder %s1123_s22, 1  ;;  %p291_p7 = scmp.eq.s32.totalorder %s288_s28, 0 }
   0xd   : > { %p1241_p8 = por %p310_p5, %p309_p3  ;;  %p378_p9 = scmp.lt.s32.totalorder %s1123_s22, 3 }
   0xe   : > { %s1247_s30 = scalar_select %p291_p7, %s1111_s19, %s293_s26  }
   0xf   : > { %s1401_s29 = scalar_select %p1241_p8, 1, 0 }
  0x10   : > { %1403 = sst [smem:[#allocation13_spill]] %s1247_s30  ;;  %p379_p10 = pnand %p869_p6, %p378_p9 }
  0x11   : > { %1402 = sst [smem:[#allocation12_spill]] %s1401_s29  ;;  %s1394_s12 = sand.u32 (!%p379_p10), 1, %s1107_s18  }
  0x12   : > { %382 = sbr.rel (%p379_p10) target bundleno = 988 (0x3dc), region = 64  ;;  %p430_p11 = scmp.lt.s32.totalorder (!%p379_p10), %s1115_s20, 1 }
  0x13   : > { %s1253_s13 = sshll.u32 (!%p379_p10), %s1394_s12, 3  ;;  %s1268_s17 = smov (!%p379_p10), 0  }
  0x17   : > { %s431_s14 = scalar_select %p430_p11, %s1115_s20, 1 }
  0x19   : > { %s871_s15 = sshll.u32 %s431_s14, 2  ;;  %s938_s16 = sshll.u32 %s431_s14, 3 }
  0x1a   : > { %s1259_s26 = scalar_lea.vmem %s1378_s0, %s871_s15  ;;  %s441_s21 = scalar_lea.vmem %s1379_s1, %s938_s16 }
  0x1b   : > { %s446_s29 = scalar_lea.vmem %s1380_s2, %s938_s16  ;;  %v880_v0 = vld [vmem:[%s441_s21] sm:$0xf]  ;;  %v940_v1 = vld [vmem:[%s441_s21] sm:$0xf0] }
  0x1c   : > { %v894_v2 = vld [vmem:[%s446_s29] sm:$0xf]  ;;  %v941_v3 = vld [vmem:[%s446_s29] sm:$0xf0] }
  0x1d LB: >> { %s942_s25 = sshll.u32 %s1127_s17, 4  ;;  %s469_s19 = scalar_lea.vmem %s1384_s6, %s1127_s17  ;;  %v881_v8 = vor.u32 %v940_v1, %v880_v0  ;;  %v895_v9 = vor.u32 %v941_v3, %v894_v2  ;;  %vm491_vm0 = vcmask 261120   ;;  %vm559_vm1 = vcmask 60416   ;;  %s1127_s17 = sphi %s1268_s17, %s461_s17  }
  0x1e   : >> { %s464_s29 = scalar_lea.vmem %s1383_s5, %s942_s25  ;;  %s510_s24 = scalar_lea.vmem %s1385_s7, %s942_s25  ;;  %v1029_v10 = vld [vmem:[%s469_s19] ss:$0 sm:$0xff] }
  0x1f   : >> { %v944_v4 = vld [vmem:[%s464_s29 + $0x8] sm:$0xff]  ;;  %v943_v6 = vld [vmem:[%s464_s29] sm:$0xff]  ;;  %s515_s14 = scalar_lea.vmem %s1386_s8, %s1127_s17  ;;  %s948_s25 = sshll.u32 %s1127_s17, 3 }
  0x20   : >> { %v947_v5 = vld [vmem:[%s510_s24 + $0x8] sm:$0xff]  ;;  %501 = vmatpush.bf16.msra.mxu0 %v944_v4  ;;  %v946_v7 = vld [vmem:[%s510_s24] sm:$0xff]  ;;  %s558_s12 = scalar_lea.vmem [#allocation2], %s948_s25  ;;  %s565_s15 = scalar_lea.vmem [#allocation3], %s948_s25 }
  0x21   : >> { %546 = vmatpush.bf16.msra.mxu1 %v947_v5  ;;  %v1030_v11 = vld [vmem:[%s515_s14] ss:$0 sm:$0xff]  ;;  %s461_s17 = sadd.s32 1, %s1127_s17  }
  0x22   : >> { %p458_p12 = scmp.ge.s32.totalorder %s461_s17, 4  }
  0x23   : > { %v1295_v24 = vld [vmem:[%s1259_s26] sm:$0xf] (%p458_p12)  ;;  %v1133_v25 = vmov (%p458_p12), 0.0   ;;  %s1298_s19 = smov (%p458_p12), 0  }
  0x24   : >> { %502 = vmatpush.bf16.msra.mxu0 %v943_v6  ;;  %570 = vst.msk [vmem:[#allocation4] sm:$0xff] (%p458_p12), %vm491_vm0, %v1133_v25 }
  0x25   : >> { %547 = vmatpush.bf16.msra.mxu1 %v946_v7 }
  0x27   : >> { %890 = vmatmul.msk.bf16.vlgmr.msra.gmra.mxu0 %vm491_vm0, %v881_v8 }
  0x28   : >> { %904 = vmatmul.msk.bf16.vlgmr.msra.gmra.mxu1 %vm491_vm0, %v895_v9 }
  0xa4   : >> { %v504_v12 = vpop.f32.mrf.mxu0 }
  0xa5   : >> { %v549_v13 = vpop.f32.mrf.mxu1  ;;  %v505_v14 = vadd.f32 %v1029_v10, %v504_v12 }
  0xa6   : >> { %v550_v15 = vadd.f32 %v1030_v11, %v549_v13 }
  0xa7   : >> { %v554_v16 = vpack.c.bf16 %v505_v14, %v505_v14 }
  0xa8   : >> { %v562_v17 = vpack.c.bf16 %v550_v15, %v550_v15 }
  0xa9   : >> { %560 = vst.msk [vmem:[%s558_s12] sm:$0xf] %vm559_vm1, %v554_v16 }
  0xaa   : >> { %566 = vst.msk [vmem:[%s565_s15] sm:$0xf] %vm559_vm1, %v562_v17 }
  0xac   : >> { %v506_v18 = vpop.f32.mrf.mxu0 }
  0xad   : >> { %v551_v19 = vpop.f32.mrf.mxu1  ;;  %v507_v20 = vadd.f32 %v1029_v10, %v506_v18 }
  0xae   : >> { %v552_v21 = vadd.f32 %v1030_v11, %v551_v19  ;;  %460 = sbr.rel (!%p458_p12) target bundleno = 29 (0x1d), region = 134 }
  0xaf   : >> { %v555_v22 = vpack.c.bf16 %v507_v20, %v507_v20 }
  0xb0   : >> { %v563_v23 = vpack.c.bf16 %v552_v21, %v552_v21 }
  0xb1   : >> { %561 = vst.msk [vmem:[%s558_s12 + $0x4] sm:$0xf] %vm559_vm1, %v555_v22 }
  0xb2   : >> { %567 = vst.msk [vmem:[%s565_s15 + $0x4] sm:$0xf] %vm559_vm1, %v563_v23 }
  0xb3 LB: >> { %s950_s30 = sshll.u32 %s1131_s19, 4  ;;  %s953_s17 = sshll.u32 %s1131_s19, 3  ;;  %vm632_vm2 = vcmask 64512   ;;  %vm652_vm3 = vcmask 130048   ;;  %vm698_vm4 = vcmask 1043456   ;;  %v690_v56 = vld [vmem:[#allocation4] sm:$0xff]  ;;  %s1131_s19 = sphi %s1298_s19, %s576_s19  }
  0xb4   : >> { %s579_s26 = scalar_lea.vmem %s1381_s3, %s950_s30  ;;  %s620_s16 = scalar_lea.vmem [#allocation2], %s953_s17 }
  0xb5   : >> { %v952_v26 = vld [vmem:[%s579_s26 + $0x8] sm:$0xff]  ;;  %s584_s28 = scalar_lea.vmem %s1382_s4, %s1131_s19  ;;  %v951_v28 = vld [vmem:[%s579_s26] sm:$0xff]  ;;  %s624_s14 = scalar_lea.vmem [#allocation3], %s953_s17 }
  0xb6   : >> { %610 = vmatpush.bf16.msra.mxu0 %v952_v26  ;;  %v1031_v30 = vld [vmem:[%s584_s28] ss:$0 sm:$0xff]  ;;  %s932_s25 = sshll.u32 %s1131_s19, 2  ;;  %s576_s19 = sadd.s32 1, %s1131_s19  }
  0xb7   : >> { %s693_s30 = scalar_lea.vmem %s1387_s9, %s932_s25  ;;  %p573_p13 = scmp.ge.s32.totalorder %s576_s19, 4  }
  0xb8   : >> { %v954_v27 = vld [vmem:[%s620_s16] sm:$0xff]  ;;  %s935_s29 = sshll.u32 (%p573_p13), %s1115_s20, 3  ;;  %s1404_s26 = scalar_lea.vmem (%p573_p13), [#allocation5], %s1253_s13 }
  0xb9   : >> { %v637_v29 = vsel %vm632_vm2, %v954_v27, 0  ;;  %v956_v43 = vld [vmem:[%s624_s14] sm:$0xff]  ;;  %s738_s16 = sshll.u32 (%p573_p13), %s1404_s26, 4  ;;  %s736_s28 = scalar_lea.hbm (%p573_p13), %s1389_s11, %s935_s29  ;;  %s739_s16 = int_to_ptr.vmem [resolvable:$true] %s738_s16 }
  0xba   : >> { %646 = vmatpush.bf16.xpose.msra.mxu1 %v637_v29  ;;  %611 = vmatpush.bf16.msra.mxu0 %v951_v28  ;;  %v694_v51 = vld [vmem:[%s693_s30] sm:$0xf]  ;;  %s740_s19 = sshll.u32 (%p573_p13), %s736_s28, 4  ;;  %s1405_s14 = smov (%p573_p13), %s1404_s26  ;;  %s741_s19 = int_to_ptr.hbm [resolvable:$true] %s740_s19 }
  0xbb   : >> { %684 = vmatpush.bf16.msra.mxu2 %v956_v43  ;;  %v700_v52 = vsel %vm698_vm4, %v694_v51, 0  ;;  %v1036_v61 = vld [vmem:[%s1388_s10] ss:$0 sm:$0xff] (%p573_p13)  ;;  %s1406_s25 = sand.u32 (%p573_p13), 1, %s1107_s18   ;;  %s1051_s15 = sshra.s32 (%p573_p13), %s741_s19, 4  ;;  %s1052_s15 = int_to_ptr.hbm [resolvable:$true] %s1051_s15 }
  0xbc   : >> { %709 = vmatpush.bf16.msra.mxu3 %v700_v52  ;;  %s725_s12 = scalar_lea.sflag (%p573_p13), [#allocation6], %s1406_s25  ;;  %s1053_s30 = scalar_lea.hbm (%p573_p13), %s1052_s15, 8 }
  0xbd   : >> { %918 = vmatmul.msk.bf16.vlgmr.msra.gmra.mxu0 %vm491_vm0, %v1295_v24  ;;  %p1054_p0 = scmp.ne.s32.totalorder (%p573_p13), %s1052_s15, %s1053_s30  ;;  %s1057_s21 = scalar_lea.hbm (%p573_p13), %s1389_s11, 16 }
  0xbe   : > { %p1058_p3 = scmp.lt.s32.totalorder (%p573_p13), %s1052_s15, %s1389_s11  ;;  %p1059_p5 = scmp.lt.s32.totalorder (%p573_p13), %s1057_s21, %s1053_s30 }
  0xbf   : > { %p1055_p1 = pnand (%p573_p13), %p1054_p0, %p1234_p4 }
  0xc0   : > { %p1060_p6 = por (%p573_p13), %p1059_p5, %p1058_p3 }
  0xc1   : > { %p1056_p2 = pneg (%p573_p13), %p1055_p1 }
  0xc3   : > { %p1061_p7 = pnand (%p573_p13), %p1060_p6, %p1056_p2 }
 0x13a   : >> { %v613_v31 = vpop.f32.mrf.mxu0 }
 0x13b   : >> { %v614_v32 = vadd.f32 %v1031_v30, %v613_v31 }
 0x13d   : >> { %v617_v33 = vpack.c.bf16 %v614_v32, %v614_v32 }
 0x13f   : >> { %926 = vmatmul.msk.bf16.vlgmr.msra.gmra.mxu1 %vm632_vm2, %v617_v33 }
 0x142   : >> { %v615_v34 = vpop.f32.mrf.mxu0 }
 0x1bc   : >> { %v648_v35 = vpop.f32.mrf.mxu1 }
 0x1bd   : >> { %v653_v36 = vsel %vm652_vm3, %v648_v35, -inf }
 0x1be   : >> { %654 = vmax.xlane.f32.xlu0 %v653_v36 }
 0x1c4   : >> { %v650_v37 = vpop.f32.mrf.mxu1 }
 0x231   : >> { %v655_v38 = vpop.xlane.xlu0 %654 }
 0x232   : >> { %v656_v39 = vsub.f32 %v648_v35, %v655_v38 }
 0x234   : >> { %v657_v40 = vmul.f32 1.442695, %v656_v39 }
 0x236   : >> { %1032 = vpow2.f32 %v657_v40 }
 0x23c   : >> { %v1033_v41 = vpop.eup %1032 }
 0x23d   : >> { %v659_v42 = vsel %vm652_vm3, %v1033_v41, 0.0 }
 0x23e   : >> { %660 = vadd.xlane.f32.xlu0 %v659_v42 }
 0x2b1   : >> { %v661_v44 = vpop.xlane.xlu0 %660 }
 0x2b2   : >> { %1034 = vrcp.f32 %v661_v44 }
 0x2b8   : >> { %v1035_v45 = vpop.eup %1034 }
 0x2b9   : >> { %v663_v46 = vmul.f32 %v1035_v45, %v661_v44 }
 0x2bb   : >> { %v664_v47 = vsub.f32 2.0, %v663_v46 }
 0x2bd   : >> { %v665_v48 = vmul.f32 %v1035_v45, %v664_v47 }
 0x2bf   : >> { %v666_v49 = vmul.f32 %v1033_v41, %v665_v48 }
 0x2c1   : >> { %v667_v50 = vpack.c.bf16 %v666_v49, %v666_v49 }
 0x2c3   : >> { %931 = vmatmul.msk.bf16.vlgmr.msra.gmra.mxu2 %vm652_vm3, %v667_v50 }
 0x346   : >> { %v686_v53 = vpop.f32.mrf.mxu2 }
 0x347   : >> { %v691_v54 = vpack.c.bf16 %v686_v53, %v686_v53 }
 0x349   : >> { %933 = vmatmul.msk.bf16.vlgmr.msra.gmra.mxu3 %vm632_vm2, %v691_v54 }
 0x34e   : >> { %v688_v55 = vpop.f32.mrf.mxu2 }
 0x3cc   : >> { %v711_v57 = vpop.f32.mrf.mxu3 }
 0x3cd   : >> { %v715_v58 = vadd.f32 %v711_v57, %v690_v56 }
 0x3cf   : >> { %716 = vst.msk [vmem:[#allocation4] sm:$0xff] %vm491_vm0, %v715_v58 }
 0x3d4   : >> { %v713_v59 = vpop.f32.mrf.mxu3  ;;  %575 = sbr.rel (!%p573_p13) target bundleno = 179 (0xb3), region = 145 }
 0x3d6   : > { %v717_v60 = vld [vmem:[#allocation4] sm:$0xff] (%p573_p13) }
 0x3d7   : > { %v722_v62 = vadd.f32 (%p573_p13), %v1036_v61, %v717_v60 }
 0x3d9   : > { %723 = vst.msk [vmem:[%s1405_s14] sm:$0xff] %vm491_vm0, %v722_v62 }
 0x3da   : > { %1064 = shalt.err (!%p1061_p7)
}
 0x3db   : > { %957 = dma.vmem_to_hbm [thread:$0]  (%p1234_p4), %s739_s16, 128, %s741_s19, %s725_s12  }
 0x3dc PF: > { %s1407_s13 = sld [smem:[#allocation8_spill]]  ;;  %p963_p9 = scmp.ge.s32.totalorder %s1123_s22, 2 }
 0x3de   : > { %p960_p10 = pnand %p963_p9, %p1241_p8 }
 0x3e0   : > { %p961_p11 = pneg %p960_p10 }
 0x3e2   : > { %s752_s24 = sand.u32 1, %s1407_s13  }
 0x3e3   : > { %s753_s28 = scalar_lea.sflag [#allocation6], %s752_s24 }
 0x3e4   : > { %1098 = dma.done.wait (%p961_p11), %s753_s28, 128  }
 0x3e5   : > { %1100 = vsyncadd (%p961_p11), %s753_s28, 4294967168  ;;  %s24_s22 = sadd.s32 1, %s1123_s22   ;;  %s1409_s14 = sld [smem:[#allocation9_spill]] }
 0x3e6   : > { %p21_p12 = scmp.ge.s32.totalorder %s24_s22, 4   ;;  %s1410_s19 = sld [smem:[#allocation13_spill]] }
 0x3e7   : > { %s1411_s20 = sld [smem:[#allocation10_spill]]  ;;  %s1413_s17 = smov %s1107_s18 }
 0x3e8   : > { %s1412_s21 = sld [smem:[#allocation11_spill]]  ;;  %23 = sbr.rel (!%p21_p12) target bundleno = 4 (0x4), region = 156 }
 0x3eb   : > { %s1414_s18 = smov %s1409_s14 }
 0x3ed   :  { %759 = vsyncpa [#allocation6], 1 }
 0x3ee   :  { %761 = vsyncpa [#allocation6 + $0x1], 1 }

</bundles_post_ra>
